<compile_context>
chip_gen: v7x
topology: tpu7x:2x2x1
jax: 0.10.0
libtpu: 0.0.40
codegen_flags: <defaults>
</compile_context>

<pallas_src>
import functools

import numpy as np
import jax
import jax.numpy as jnp
from jax.experimental import pallas as pl
from jax.experimental.pallas import tpu as pltpu

_DEFAULT_TILE_BYTES = 8 << 20  # ~8 MiB input tiles (double-buffered by Pallas)


def _vmem_limit_bytes(tile_bytes):
    # 2x (double-buffer) input tile + small scratch/output + ~25% headroom.
    return int(min(max(int(2.5 * tile_bytes) + (4 << 20), 16 << 20), 48 << 20))


def _reg_energy_kernel(x_ref, o_ref, acc_ref, *, rows_valid, rows_per_block,
                       rb_per_split, need_mask):
    """Streaming path. Grid = (N, split, row_blocks_per_split).

    x_ref  : (1, R, L) VMEM tile of the reshaped input (input dtype)
    o_ref  : (1, 1, 8, 128) per-(batch, split) output block (written at last j)
    acc_ref: (8, L) f32 partial-sum accumulator (persists across the j axis)
    """
    s = pl.program_id(1)
    j = pl.program_id(2)
    gj = s * rb_per_split + j  # nominal (unclamped) global row-block index

    @pl.when(j == 0)
    def _():
        acc_ref[...] = jnp.zeros_like(acc_ref)

    # Cast in-kernel (keeps HBM traffic at input width, e.g. bf16).
    x = x_ref[0].astype(jnp.float32)  # (R, L)
    sq = x * x
    R, L = sq.shape

    def _accum(v):
        # Grouped sublane partial sums: pure VALU adds into a tiny (8, L)
        # accumulator; the single cross-lane/sublane reduce happens only once
        # per (batch, split), at the last j.
        acc_ref[...] += v.reshape(R // 8, 8, L).sum(axis=0)

    if need_mask:
        is_partial = (gj + 1) * rows_per_block > rows_valid

        @pl.when(is_partial)
        def _():
            # Mask rows past the real row extent (partial or fully-OOB blocks).
            # jnp.where is a select: stale/garbage data in the padded region is
            # squared but never selected, so NaN/Inf cannot propagate.
            row = (jax.lax.broadcasted_iota(jnp.int32, sq.shape, 0)
                   + gj * rows_per_block)
            _accum(jnp.where(row < rows_valid, sq, 0.0))

        @pl.when(jnp.logical_not(is_partial))
        def _():
            _accum(sq)
    else:
        _accum(sq)

    @pl.when(j == pl.num_programs(2) - 1)
    def _():
        total = jnp.sum(acc_ref[...])   # single XLU reduce per (batch, split)
        o_ref[...] = jnp.full(o_ref.shape, total, o_ref.dtype)


def _reg_energy_batched_kernel(x_ref, o_ref):
    """Small-M path: NB whole batch rows per grid step.

    x_ref: (NB, Mr, L) tile; o_ref: (NB, 8, 128) per-row energies.
    Rows of a partial last batch block read stale data; their outputs fall
    outside the array and are dropped by the writeback, and rows are
    independent so nothing leaks into valid rows.
    """
    x = x_ref[...].astype(jnp.float32)      # (NB, Mr, L)
    sq = x * x
    ps = jnp.sum(sq, axis=1)                # (NB, L)
    tot = jnp.sum(ps, axis=-1)              # (NB,)
    o_ref[...] = jnp.broadcast_to(tot[:, None, None], o_ref.shape)


def reg_loss_forward(x, *, target_tile_bytes=_DEFAULT_TILE_BYTES):
    """Pallas implementation of RegLoss.forward with identity diff_op.

    x: float array of shape (N, a, b, c, d, e)  (6-D, matching the torch
       reduction over dims (1,2,3,4,5)).
    returns: y of shape (N,), y[i] = sum(x[i] ** 2)   (identity _loss)
    """
    assert x.ndim == 6, "RegLoss reduces over dims (1..5); input must be 6-D"
    N = x.shape[0]
    M = int(np.prod(x.shape[1:]))

    xf = x.reshape(N, M)  # free reshape, no dtype cast, no pad

    # Ragged lane tail (< 128 elements per row): handled in plain JAX instead
    # of a full jnp.pad read+write pass over the tensor.
    main_len = (M // 128) * 128
    tail_len = M - main_len
    tail = None
    if tail_len:
        tail = jnp.sum(xf[:, main_len:].astype(jnp.float32) ** 2, axis=-1)
    if main_len == 0:
        # TODO(synk): per-row feature volume < 128 elements; pure-JAX fallback.
        return tail

    if tail_len:
        # TODO(synk): the main-slab slice still materialises one copy of the
        # main slab; cheaper than padding the full tensor, rare path anyway.
        xm = xf[:, :main_len]
    else:
        xm = xf

    # Lane width L (multiple of 128) dividing the main slab length.
    L = next(l for l in (1024, 512, 256, 128) if main_len % l == 0)
    Mr = main_len // L
    x3 = xm.reshape(N, Mr, L)

    itemsize = jnp.dtype(x.dtype).itemsize
    row_bytes = Mr * L * itemsize

    if N >= 2 and 2 * row_bytes <= target_tile_bytes:
        # ---------------- small-M path: fold batch rows per tile ------------
        NB = int(min(N, max(1, target_tile_bytes // row_bytes)))
        tile_bytes = NB * row_bytes
        out = pl.pallas_call(
            _reg_energy_batched_kernel,
            out_shape=jax.ShapeDtypeStruct((N, 8, 128), jnp.float32),
            grid_spec=pltpu.PrefetchScalarGridSpec(
                num_scalar_prefetch=0,
                grid=(pl.cdiv(N, NB),),
                in_specs=[pl.BlockSpec((NB, Mr, L), lambda i: (i, 0, 0))],
                out_specs=pl.BlockSpec((NB, 8, 128), lambda i: (i, 0, 0)),
            ),
            compiler_params=pltpu.CompilerParams(
                dimension_semantics=("parallel",),
                vmem_limit_bytes=_vmem_limit_bytes(tile_bytes),
            ),
        )(x3)
        energy = out[:, 0, 0]
    else:
        # ---------------- streaming path: big lane-dense tiles --------------
        rows_target = max(8, (target_tile_bytes // (L * itemsize)) // 8 * 8)
        rows_avail = ((Mr + 7) // 8) * 8
        rows_target = min(rows_target, rows_avail)

        # Prefer an R that divides Mr (no mask work at all), but do not shrink
        # the tile by more than ~2x for it.
        R = rows_target
        r = rows_target
        while r >= max(8, rows_target // 2):
            if Mr % r == 0:
                R = r
                break
            r -= 8

        n_row_blocks = pl.cdiv(Mr, R)
        # Split the reduction range in two so both v7x TensorCores get work
        # even when N is small/odd; partials are added in the wrapper.
        split = 2 if n_row_blocks >= 2 else 1
        rb_per_split = pl.cdiv(n_row_blocks, split)
        need_mask = (split * rb_per_split * R) != Mr
        tile_bytes = R * L * itemsize

        if split * rb_per_split > n_row_blocks:
            # Clamp fully-out-of-range block indices of the last split to the
            # last real block (never issue a fully-OOB DMA); the in-kernel
            # row mask zeroes their contribution.
            def x_map(i, s, j):
                return (i, jnp.minimum(s * rb_per_split + j, n_row_blocks - 1), 0)
        else:
            def x_map(i, s, j):
                return (i, s * rb_per_split + j, 0)

        kernel = functools.partial(
            _reg_energy_kernel,
            rows_valid=Mr,
            rows_per_block=R,
            rb_per_split=rb_per_split,
            need_mask=need_mask,
        )

        out = pl.pallas_call(
            kernel,
            out_shape=jax.ShapeDtypeStruct((N, split, 8, 128), jnp.float32),
            grid_spec=pltpu.PrefetchScalarGridSpec(
                num_scalar_prefetch=0,
                grid=(N, split, rb_per_split),
                in_specs=[pl.BlockSpec((1, R, L), x_map)],
                out_specs=pl.BlockSpec((1, 1, 8, 128),
                                       lambda i, s, j: (i, s, 0, 0)),
                scratch_shapes=[pltpu.VMEM((8, L), jnp.float32)],
            ),
            compiler_params=pltpu.CompilerParams(
                dimension_semantics=("parallel", "parallel", "arbitrary"),
                vmem_limit_bytes=_vmem_limit_bytes(tile_bytes),
            ),
        )(x3)
        energy = out[:, :, 0, 0].sum(axis=1)

    if tail is not None:
        energy = energy + tail
    return energy


if __name__ == "__main__":
    key = jax.random.PRNGKey(0)
    k1, k2, k3, k4 = jax.random.split(key, 4)

    # 1) Module-consistent shape: dims=(8,8,8), 3 field components
    #    -> input [N, 1, 3, D, H, W]; exercises the batched small-M path.
    x1 = jax.random.normal(k1, (2, 1, 3, 8, 8, 8), dtype=jnp.float32)
    y1 = jax.block_until_ready(reg_loss_forward(x1))
    r1 = jnp.sum(x1.astype(jnp.float32) ** 2, axis=(1, 2, 3, 4, 5))
    np.testing.assert_allclose(np.asarray(y1), np.asarray(r1), rtol=1e-5, atol=1e-5)

    # 2) Streaming path with megacore split + partial-row-block masking
    #    (small tiles forced to exercise multi-block reduction on a small array).
    x2 = jax.random.normal(k2, (3, 1, 3, 16, 16, 16), dtype=jnp.float32)
    y2 = jax.block_until_ready(reg_loss_forward(x2, target_tile_bytes=32 * 1024))
    r2 = jnp.sum(x2.astype(jnp.float32) ** 2, axis=(1, 2, 3, 4, 5))
    np.testing.assert_allclose(np.asarray(y2), np.asarray(r2), rtol=1e-5, atol=1e-5)

    # 3) bf16 input + batch fold where NB does not divide N (partial out block).
    x3 = jax.random.normal(k3, (5, 1, 3, 8, 8, 8), dtype=jnp.bfloat16)
    y3 = jax.block_until_ready(reg_loss_forward(x3, target_tile_bytes=8 * 1024))
    r3 = jnp.sum(x3.astype(jnp.float32) ** 2, axis=(1, 2, 3, 4, 5))
    np.testing.assert_allclose(np.asarray(y3), np.asarray(r3), rtol=1e-4, atol=1e-4)

    # 4) Ragged feature volume (M % 128 != 0): main slab kernel + plain-JAX tail.
    x4 = jax.random.normal(k4, (2, 1, 3, 5, 5, 5), dtype=jnp.float32)
    y4 = jax.block_until_ready(reg_loss_forward(x4))
    r4 = jnp.sum(x4.astype(jnp.float32) ** 2, axis=(1, 2, 3, 4, 5))
    np.testing.assert_allclose(np.asarray(y4), np.asarray(r4), rtol=1e-5, atol=1e-5)

    print("KERNEL_OK")
</pallas_src>

<mosaic_0001>
module attributes {stable_mosaic.version = 11 : i64} {
  func.func @_reg_energy_batched_kernel(%arg0: i32, %arg1: memref<2x3x512xf32, #tpu.memory_space<vmem>>, %arg2: memref<2x8x128xf32, #tpu.memory_space<vmem>>) attributes {dimension_semantics = [#tpu.dimension_semantics<parallel>], iteration_bounds = array<i64: 1>, scalar_prefetch = 0 : i64, scratch_operands = 0 : i64, tpu.core_type = #tpu.core_type<tc>, window_params = [{transform_indices = @transform_0, window_bounds = array<i64: 2, 3, 512>}, {transform_indices = @transform_1, window_bounds = array<i64: 2, 8, 128>}]} {
    %c0 = arith.constant 0 : index
    %c0_0 = arith.constant 0 : index
    %c0_1 = arith.constant 0 : index
    %0 = vector.load %arg1[%c0, %c0_0, %c0_1] : memref<2x3x512xf32, #tpu.memory_space<vmem>>, vector<2x3x512xf32>
    %1 = arith.mulf %0, %0 : vector<2x3x512xf32>
    %cst = arith.constant dense<0.000000e+00> : vector<2x512xf32>
    %2 = vector.multi_reduction <add>, %1, %cst [1] : vector<2x3x512xf32> to vector<2x512xf32>
    %cst_2 = arith.constant dense<0.000000e+00> : vector<2xf32>
    %3 = vector.multi_reduction <add>, %2, %cst_2 [1] : vector<2x512xf32> to vector<2xf32>
    %4 = vector.shape_cast %3 : vector<2xf32> to vector<2x1x1xf32>
    %5 = vector.shape_cast %4 : vector<2x1x1xf32> to vector<2x1x1xf32>
    %6 = vector.broadcast %5 : vector<2x1x1xf32> to vector<2x8x128xf32>
    %c0_3 = arith.constant 0 : index
    %c0_4 = arith.constant 0 : index
    %c0_5 = arith.constant 0 : index
    %7 = vector.load %arg2[%c0_3, %c0_4, %c0_5] : memref<2x8x128xf32, #tpu.memory_space<vmem>>, vector<2x8x128xf32>
    tpu.vector_store %arg2[%c0_3, %c0_4, %c0_5], %6 {strides = array<i32>} : memref<2x8x128xf32, #tpu.memory_space<vmem>>, vector<2x8x128xf32>,
    return
  }
  func.func @transform_0(%arg0: i32) -> (i32, i32, i32) {
    %c0_i32 = arith.constant 0 : i32
    %c0_i32_0 = arith.constant 0 : i32
    %c0_i32_1 = arith.constant 0 : i32
    return %arg0, %c0_i32, %c0_i32_0 : i32, i32, i32
  }
  func.func @transform_1(%arg0: i32) -> (i32, i32, i32) {
    %c0_i32 = arith.constant 0 : i32
    %c0_i32_0 = arith.constant 0 : i32
    %c0_i32_1 = arith.constant 0 : i32
    return %arg0, %c0_i32, %c0_i32_0 : i32, i32, i32
  }
}

</mosaic_0001>

<bundles_post_ra>
// kernel: tpu_custom_call.1
= control target key start
LH: loop header
LB: loop body
LE: loop exit
PB: predicated region body
PF: predicated region fallthrough
CT: control target
= control target key end

     0   :  { %vm29_vm0 = vcmask 1042432   ;;  %s222_s0 = inlined_call_operand.vmem [shape: f32[2,3,512], index: 0, kind: input, shape index: {}]   ;;  %s223_s1 = inlined_call_operand.hbm [shape: f32[2,8,128], index: 1, kind: output, shape index: {}]  }
   0x1   :  { %v9_v0 = vld [vmem:[%s222_s0] sm:$0x77]  ;;  %v10_v1 = vld [vmem:[%s222_s0 + $0x8] sm:$0x77]  ;;  %v11_v2 = vld [vmem:[%s222_s0 + $0x10] sm:$0x77] }
   0x2   :  { %v12_v3 = vld [vmem:[%s222_s0 + $0x18] sm:$0x77]  ;;  %v13_v4 = vmul.f32 %v9_v0, %v9_v0  ;;  %v14_v5 = vmul.f32 %v10_v1, %v10_v1  ;;  %v15_v6 = vmul.f32 %v11_v2, %v11_v2 }
   0x3   :  { %6 = vsyncpa [#allocation3], 0  ;;  %v16_v7 = vmul.f32 %v12_v3, %v12_v3  ;;  %vm94_vm1 = vcmask 1041409   ;;  %vm103_vm2 = vcmask 1041408   ;;  %s169_s0 = smov [#allocation2]  }
   0x4   :  { %v21_v8 = vcombine.high %v13_v4, %v13_v4  ;;  %v22_v9 = vcombine.high %v14_v5, %v14_v5  ;;  %v23_v10 = vcombine.high %v15_v6, %v15_v6  ;;  %v30_v11 = vsel %vm29_vm0, %v13_v4, 0.0  ;;  %s131_s14 = sshll.u32 %s169_s0, 4  ;;  %s132_s14 = int_to_ptr.vmem [resolvable:$true] %s131_s14 }
   0x5   :  { %v24_v12 = vcombine.high %v16_v7, %v16_v7  ;;  %v31_v13 = vrot.slane %v30_v11, 4  ;;  %v44_v14 = vsel %vm29_vm0, %v14_v5, 0.0  ;;  %v58_v15 = vsel %vm29_vm0, %v15_v6, 0.0  ;;  %s145_s15 = scalar_lea.vmem %s132_s14, 256  ;;  %p150_p1 = scmp.lt.s32.totalorder %s132_s14, %s132_s14 }
   0x6   :  { %v37_v16 = vsel %vm29_vm0, %v21_v8, 0.0  ;;  %v45_v17 = vrot.slane %v44_v14, 4  ;;  %v51_v18 = vsel %vm29_vm0, %v22_v9, 0.0  ;;  %v59_v19 = vrot.slane %v58_v15, 4  ;;  %p146_p0 = scmp.ne.s32.totalorder %s132_s14, %s145_s15  ;;  %p151_p2 = scmp.lt.s32.totalorder %s145_s15, %s145_s15 }
   0x7   :  { %v32_v20 = vadd.f32 %v31_v13, %v30_v11  ;;  %v38_v21 = vrot.slane %v37_v16, 4  ;;  %v52_v22 = vrot.slane %v51_v18, 4  ;;  %v65_v23 = vsel %vm29_vm0, %v23_v10, 0.0 }
   0x8   :  { %v46_v24 = vadd.f32 %v45_v17, %v44_v14  ;;  %v60_v25 = vadd.f32 %v59_v19, %v58_v15  ;;  %v66_v26 = vrot.slane %v65_v23, 4  ;;  %v72_v27 = vsel %vm29_vm0, %v16_v7, 0.0  ;;  %p152_p3 = por %p151_p2, %p150_p1 }
   0x9   :  { %v33_v28 = vrot.slane %v32_v20, 2  ;;  %v39_v29 = vadd.f32 %v38_v21, %v37_v16  ;;  %v53_v30 = vadd.f32 %v52_v22, %v51_v18  ;;  %v73_v31 = vrot.slane %v72_v27, 4 }
   0xa   :  { %v47_v32 = vrot.slane %v46_v24, 2  ;;  %v61_v33 = vrot.slane %v60_v25, 2  ;;  %v67_v34 = vadd.f32 %v66_v26, %v65_v23  ;;  %v79_v35 = vsel %vm29_vm0, %v24_v12, 0.0  ;;  %p153_p4 = pnand %p152_p3, %p146_p0 }
   0xb   :  { %v34_v36 = vadd.f32 %v33_v28, %v32_v20  ;;  %v40_v37 = vrot.slane %v39_v29, 2  ;;  %v54_v38 = vrot.slane %v53_v30, 2  ;;  %v74_v39 = vadd.f32 %v73_v31, %v72_v27 }
   0xc   :  { %v48_v40 = vadd.f32 %v47_v32, %v46_v24  ;;  %v62_v41 = vadd.f32 %v61_v33, %v60_v25  ;;  %v68_v42 = vrot.slane %v67_v34, 2  ;;  %v80_v43 = vrot.slane %v79_v35, 4 }
   0xd   :  { %v35_v44 = vrot.slane %v34_v36, 1  ;;  %v41_v45 = vadd.f32 %v40_v37, %v39_v29  ;;  %v55_v46 = vadd.f32 %v54_v38, %v53_v30  ;;  %v75_v47 = vrot.slane %v74_v39, 2 }
   0xe   :  { %v49_v48 = vrot.slane %v48_v40, 1  ;;  %v63_v49 = vrot.slane %v62_v41, 1  ;;  %v69_v50 = vadd.f32 %v68_v42, %v67_v34  ;;  %v81_v51 = vadd.f32 %v80_v43, %v79_v35 }
   0xf   :  { %v36_v52 = vadd.f32 %v35_v44, %v34_v36  ;;  %v42_v53 = vrot.slane %v41_v45, 1  ;;  %v76_v54 = vadd.f32 %v75_v47, %v74_v39  ;;  %v56_v55 = vrot.slane %v55_v46, 1 }
  0x10   :  { %v64_v56 = vadd.f32 %v63_v49, %v62_v41  ;;  %v70_v57 = vrot.slane %v69_v50, 1  ;;  %v82_v58 = vrot.slane %v81_v51, 2  ;;  %v50_v60 = vadd.f32 %v49_v48, %v48_v40 }
  0x11   :  { %v43_v59 = vadd.f32 %v42_v53, %v41_v45  ;;  %v77_v61 = vrot.slane %v76_v54, 1  ;;  %v57_v3 = vadd.f32 %v56_v55, %v55_v46  ;;  %v114_v15 = vlaneseq }
  0x12   :  { %v71_v62 = vadd.f32 %v70_v57, %v69_v50  ;;  %v83_v63 = vadd.f32 %v82_v58, %v81_v51  ;;  %v95_v0 = vsel %vm94_vm1, %v64_v56, %v36_v52 }
  0x13   :  { %v78_v1 = vadd.f32 %v77_v61, %v76_v54  ;;  %v104_v2 = vsel %vm103_vm2, %v95_v0, 0.0  ;;  %v115_v16 = vshrl.u32 %v114_v15, 7 }
  0x14   :  { %v84_v4 = vrot.slane %v83_v63, 1  ;;  %v96_v5 = vsel %vm94_vm1, %v71_v62, %v43_v59 }
  0x15   :  { %v97_v6 = vsel %vm94_vm1, %v78_v1, %v50_v60  ;;  %v105_v7 = vsel %vm103_vm2, %v96_v5, 0.0  ;;  %v116_v17 = vsub.s32 0, %v115_v16  ;;  %v120_v18 = vsub.s32 1, %v115_v16 }
  0x16   :  { %v85_v8 = vadd.f32 %v84_v4, %v83_v63  ;;  %v106_v9 = vadd.f32 %v105_v7, %v104_v2  ;;  %v107_v10 = vsel %vm103_vm2, %v97_v6, 0.0 }
  0x18   :  { %v98_v11 = vsel %vm94_vm1, %v85_v8, %v57_v3  ;;  %v108_v12 = vadd.f32 %v107_v10, %v106_v9 }
  0x19   :  { %v109_v13 = vsel %vm103_vm2, %v98_v11, 0.0 }
  0x1a   :  { %v110_v14 = vadd.f32 %v109_v13, %v108_v12 }
  0x1c   :  { %111 = vadd.xlane.f32.xlu0 %v110_v14 }
  0xa9   :  { %v112_v19 = vpop.xlane.xlu0 %111 }
  0xaa   :  { %v117_v20 = vrot.slane %v112_v19, %v116_v17  ;;  %v121_v21 = vrot.slane %v112_v19, %v120_v18 }
  0xac   :  { %124 = vst [vmem:[#allocation2] sm:$0xff] %v117_v20  ;;  %125 = vst [vmem:[#allocation2 + $0x8] sm:$0xff] %v121_v21 }
  0xad   :  { %156 = shalt.err (!%p153_p4)
}
  0xae   :  { %s157_s18 = scalar_lea.hbm %s223_s1, 256 }
  0xaf   :  { %p158_p5 = scmp.ne.s32.totalorder %s223_s1, %s157_s18  ;;  %p161_p6 = scmp.lt.u32.totalorder %s157_s18, %s223_s1 }
  0xb1   :  { %p163_p7 = pnand %p161_p6, %p158_p5 }
  0xb3   :  { %166 = shalt.err (!%p163_p7)
}
  0xb4   :  { %s170_s23 = smov 128   ;;  %s171_s24 = smov 8  }
  0xb5   :  { %137 = dma.vmem_to_hbm [thread:$0]  %s132_s14, 256, %s223_s1, [#allocation3], %s170_s23, %s170_s23, %s171_s24  }
  0xb6   :  { %167 = dma.done.wait [#allocation3], 256  }
  0xb7   :  { %168 = vsyncadd [#allocation3], 4294967040 }
  0xb8   :  { %141 = vsyncpa [#allocation3], 1 }

</bundles_post_ra>
